<compile_context>
chip_gen: v7x
topology: tpu7x:2x2x1
jax: 0.10.0
libtpu: 0.0.40
codegen_flags: <defaults>
</compile_context>

<pallas_src>
import functools

import numpy as np
import jax
import jax.numpy as jnp
from jax.experimental import pallas as pl
from jax.experimental.pallas import tpu as pltpu

LN_EPS = 1e-5


def _round_up(x, m):
    return ((x + m - 1) // m) * m


def make_positional_encoding(max_len, d_model):
    """The (max_len, d_model) sin/cos table from PositionalEncoding."""
    position = np.arange(max_len, dtype=np.float32)[:, None]
    angular_speed = np.exp(
        np.arange(0, d_model, 2, dtype=np.float32) * (-np.log(10000.0) / d_model))
    pe = np.zeros((max_len, d_model), dtype=np.float32)
    pe[:, 0::2] = np.sin(position * angular_speed)
    pe[:, 1::2] = np.cos(position * angular_speed)
    return jnp.asarray(pe)


def decoder_transf_kernel(x_ref, pe_ref, gamma_ref, beta_ref, o_ref, *, d_model):
    # x_ref/o_ref: (1, TS, D) tile of one batch row; pe_ref: (TS, D) matching
    # seq tile; gamma/beta: (1, D) full-extent blocks.
    x = x_ref[...].astype(jnp.float32)

    # --- PositionalEncoding: scale + add table ---
    x = x * jnp.float32(np.sqrt(d_model)) + pe_ref[...].astype(jnp.float32)

    # TODO(synk): the decoder_layer stack (masked self-attention, cross-attention
    # and FFN sublayers) is an external constructor argument not defined in this
    # spec; it is treated as identity here.

    # --- final LayerNorm over d_model (biased variance, eps inside rsqrt) ---
    mean = jnp.mean(x, axis=-1, keepdims=True)
    xc = x - mean
    var = jnp.mean(xc * xc, axis=-1, keepdims=True)
    # gamma folded into the rsqrt scale (rsqrt itself goes to the EUP slot).
    scale = jax.lax.rsqrt(var + LN_EPS) * gamma_ref[...].astype(jnp.float32)
    o_ref[...] = (xc * scale + beta_ref[...].astype(jnp.float32)).astype(o_ref.dtype)


def decoder_transf(query, pe, gamma, beta, *, tile_s=256):
    """query: (B, S, D); pe: (max_len, D); gamma/beta: (D,). Returns (B, S, D)."""
    B, S, D = query.shape
    assert pe.shape[0] >= S and pe.shape[1] == D

    # Row tile: as large as possible (sweep 256/512/1024 at large S) but clamped
    # and 8-aligned for small S; pad S so the grid divides evenly.
    ts = min(tile_s, _round_up(S, 8))
    s_pad = _round_up(S, ts)

    q = query
    pe_slab = pe[:S]
    if s_pad != S:
        q = jnp.pad(query, ((0, 0), (0, s_pad - S), (0, 0)))
        pe_slab = jnp.pad(pe_slab, ((0, s_pad - S), (0, 0)))

    out = pl.pallas_call(
        functools.partial(decoder_transf_kernel, d_model=D),
        out_shape=jax.ShapeDtypeStruct((B, s_pad, D), query.dtype),
        grid_spec=pltpu.PrefetchScalarGridSpec(
            num_scalar_prefetch=0,
            grid=(B, s_pad // ts),
            in_specs=[
                pl.BlockSpec((1, ts, D), lambda b, s: (b, s, 0)),  # query tile
                pl.BlockSpec((ts, D), lambda b, s: (s, 0)),        # pe tile
                pl.BlockSpec((1, D), lambda b, s: (0, 0)),         # LN gamma
                pl.BlockSpec((1, D), lambda b, s: (0, 0)),         # LN beta
            ],
            out_specs=pl.BlockSpec((1, ts, D), lambda b, s: (b, s, 0)),
        ),
        # NOTE: input_output_aliases={0: 0} would remove one HBM output
        # allocation/writeback, but is only safe if the caller donates `query`;
        # left off for eager-mode safety.
        compiler_params=pltpu.CompilerParams(
            dimension_semantics=("parallel", "parallel")),
    )(q, pe_slab, gamma.reshape(1, D), beta.reshape(1, D))

    return out[:, :S, :] if s_pad != S else out


def reference(query, pe, gamma, beta):
    B, S, D = query.shape
    x = query * np.sqrt(D) + pe[None, :S, :]
    mean = jnp.mean(x, axis=-1, keepdims=True)
    var = jnp.mean((x - mean) ** 2, axis=-1, keepdims=True)
    return (x - mean) / jnp.sqrt(var + LN_EPS) * gamma + beta


if __name__ == "__main__":
    # Small but lane-dense demo shapes: d_model multiple of 128 per perf review.
    batch, seq, d_model, max_len = 2, 8, 128, 100
    key = jax.random.PRNGKey(0)
    kq, kg, kb = jax.random.split(key, 3)

    query = jax.random.normal(kq, (batch, seq, d_model), dtype=jnp.float32)
    pe = make_positional_encoding(max_len, d_model)
    # Final nn.LayerNorm parameters (torch default is ones/zeros; perturbed here
    # deterministically so the affine path is actually exercised).
    gamma = 1.0 + 0.1 * jax.random.normal(kg, (d_model,), dtype=jnp.float32)
    beta = 0.01 * jax.random.normal(kb, (d_model,), dtype=jnp.float32)

    out = decoder_transf(query, pe, gamma, beta)
    out = jax.block_until_ready(out)

    ref = reference(query, pe, gamma, beta)
    assert out.shape == (batch, seq, d_model)
    assert jnp.allclose(out, ref, atol=1e-4, rtol=1e-4), "mismatch vs reference"
    print("KERNEL_OK")
</pallas_src>

<mosaic_0001>
module attributes {stable_mosaic.version = 11 : i64} {
  func.func @decoder_transf_kernel(%arg0: i32, %arg1: i32, %arg2: memref<1x8x128xf32, #tpu.memory_space<vmem>>, %arg3: memref<8x128xf32, #tpu.memory_space<vmem>>, %arg4: memref<1x128xf32, #tpu.memory_space<vmem>>, %arg5: memref<1x128xf32, #tpu.memory_space<vmem>>, %arg6: memref<1x8x128xf32, #tpu.memory_space<vmem>>) attributes {dimension_semantics = [#tpu.dimension_semantics<parallel>, #tpu.dimension_semantics<parallel>], iteration_bounds = array<i64: 2, 1>, scalar_prefetch = 0 : i64, scratch_operands = 0 : i64, tpu.core_type = #tpu.core_type<tc>, window_params = [{transform_indices = @transform_0, window_bounds = array<i64: 1, 8, 128>}, {transform_indices = @transform_1, window_bounds = array<i64: 8, 128>}, {pipeline_mode = #tpu.pipeline_mode<synchronous>, transform_indices = @transform_2, window_bounds = array<i64: 1, 128>}, {pipeline_mode = #tpu.pipeline_mode<synchronous>, transform_indices = @transform_3, window_bounds = array<i64: 1, 128>}, {transform_indices = @transform_4, window_bounds = array<i64: 1, 8, 128>}]} {
    %c0 = arith.constant 0 : index
    %c0_0 = arith.constant 0 : index
    %c0_1 = arith.constant 0 : index
    %0 = vector.load %arg2[%c0, %c0_0, %c0_1] : memref<1x8x128xf32, #tpu.memory_space<vmem>>, vector<1x8x128xf32>
    %cst = arith.constant 11.3137083 : f32
    %1 = vector.broadcast %cst : f32 to vector<1x8x128xf32>
    %2 = arith.mulf %0, %1 : vector<1x8x128xf32>
    %c0_2 = arith.constant 0 : index
    %c0_3 = arith.constant 0 : index
    %3 = vector.load %arg3[%c0_2, %c0_3] : memref<8x128xf32, #tpu.memory_space<vmem>>, vector<8x128xf32>
    %4 = vector.shape_cast %3 : vector<8x128xf32> to vector<1x8x128xf32>
    %5 = arith.addf %2, %4 : vector<1x8x128xf32>
    %cst_4 = arith.constant dense<0.000000e+00> : vector<1x8xf32>
    %6 = vector.multi_reduction <add>, %5, %cst_4 [2] : vector<1x8x128xf32> to vector<1x8xf32>
    %7 = vector.shape_cast %6 : vector<1x8xf32> to vector<1x8x1xf32>
    %cst_5 = arith.constant 1.280000e+02 : f32
    %8 = vector.broadcast %cst_5 : f32 to vector<1x8x1xf32>
    %9 = arith.divf %7, %8 : vector<1x8x1xf32>
    %10 = vector.broadcast %9 : vector<1x8x1xf32> to vector<1x8x128xf32>
    %11 = arith.subf %5, %10 : vector<1x8x128xf32>
    %12 = arith.mulf %11, %11 : vector<1x8x128xf32>
    %cst_6 = arith.constant dense<0.000000e+00> : vector<1x8xf32>
    %13 = vector.multi_reduction <add>, %12, %cst_6 [2] : vector<1x8x128xf32> to vector<1x8xf32>
    %14 = vector.shape_cast %13 : vector<1x8xf32> to vector<1x8x1xf32>
    %cst_7 = arith.constant 1.280000e+02 : f32
    %15 = vector.broadcast %cst_7 : f32 to vector<1x8x1xf32>
    %16 = arith.divf %14, %15 : vector<1x8x1xf32>
    %cst_8 = arith.constant 9.99999974E-6 : f32
    %17 = vector.broadcast %cst_8 : f32 to vector<1x8x1xf32>
    %18 = arith.addf %16, %17 : vector<1x8x1xf32>
    %19 = math.rsqrt %18 : vector<1x8x1xf32>
    %c0_9 = arith.constant 0 : index
    %c0_10 = arith.constant 0 : index
    %20 = vector.load %arg4[%c0_9, %c0_10] : memref<1x128xf32, #tpu.memory_space<vmem>>, vector<1x128xf32>
    %21 = vector.shape_cast %20 : vector<1x128xf32> to vector<1x1x128xf32>
    %22 = vector.broadcast %19 : vector<1x8x1xf32> to vector<1x8x128xf32>
    %23 = vector.broadcast %21 : vector<1x1x128xf32> to vector<1x8x128xf32>
    %24 = arith.mulf %22, %23 : vector<1x8x128xf32>
    %25 = arith.mulf %11, %24 : vector<1x8x128xf32>
    %c0_11 = arith.constant 0 : index
    %c0_12 = arith.constant 0 : index
    %26 = vector.load %arg5[%c0_11, %c0_12] : memref<1x128xf32, #tpu.memory_space<vmem>>, vector<1x128xf32>
    %27 = vector.shape_cast %26 : vector<1x128xf32> to vector<1x1x128xf32>
    %28 = vector.broadcast %27 : vector<1x1x128xf32> to vector<1x8x128xf32>
    %29 = arith.addf %25, %28 : vector<1x8x128xf32>
    %c0_13 = arith.constant 0 : index
    %c0_14 = arith.constant 0 : index
    %c0_15 = arith.constant 0 : index
    %30 = vector.load %arg6[%c0_13, %c0_14, %c0_15] : memref<1x8x128xf32, #tpu.memory_space<vmem>>, vector<1x8x128xf32>
    tpu.vector_store %arg6[%c0_13, %c0_14, %c0_15], %29 {strides = array<i32>} : memref<1x8x128xf32, #tpu.memory_space<vmem>>, vector<1x8x128xf32>,
    return
  }
  func.func @transform_0(%arg0: i32, %arg1: i32) -> (i32, i32, i32) {
    %c0_i32 = arith.constant 0 : i32
    %c0_i32_0 = arith.constant 0 : i32
    return %arg0, %arg1, %c0_i32 : i32, i32, i32
  }
  func.func @transform_1(%arg0: i32, %arg1: i32) -> (i32, i32) {
    %c0_i32 = arith.constant 0 : i32
    %c0_i32_0 = arith.constant 0 : i32
    return %arg1, %c0_i32 : i32, i32
  }
  func.func @transform_2(%arg0: i32, %arg1: i32) -> (i32, i32) {
    %c0_i32 = arith.constant 0 : i32
    %c0_i32_0 = arith.constant 0 : i32
    %c0_i32_1 = arith.constant 0 : i32
    return %c0_i32, %c0_i32_0 : i32, i32
  }
  func.func @transform_3(%arg0: i32, %arg1: i32) -> (i32, i32) {
    %c0_i32 = arith.constant 0 : i32
    %c0_i32_0 = arith.constant 0 : i32
    %c0_i32_1 = arith.constant 0 : i32
    return %c0_i32, %c0_i32_0 : i32, i32
  }
  func.func @transform_4(%arg0: i32, %arg1: i32) -> (i32, i32, i32) {
    %c0_i32 = arith.constant 0 : i32
    %c0_i32_0 = arith.constant 0 : i32
    return %arg0, %arg1, %c0_i32 : i32, i32, i32
  }
}

</mosaic_0001>

<bundles_post_ra>
// kernel: tpu_custom_call.1
= control target key start
LH: loop header
LB: loop body
LE: loop exit
PB: predicated region body
PF: predicated region fallthrough
CT: control target
= control target key end

     0   :  { %9 = vsyncpa [#allocation3], 0  ;;  %s878_s0 = inlined_call_operand.hbm [shape: f32[2,8,128], index: 0, kind: input, shape index: {}]   ;;  %s879_s1 = inlined_call_operand.hbm [shape: f32[8,128], index: 1, kind: input, shape index: {}]   ;;  %s880_s2 = inlined_call_operand.vmem [shape: f32[1,128], index: 2, kind: input, shape index: {}]   ;;  %s881_s3 = inlined_call_operand.vmem [shape: f32[1,128], index: 3, kind: input, shape index: {}]   ;;  %s882_s4 = inlined_call_operand.hbm [shape: f32[2,8,128], index: 4, kind: output, shape index: {}]  }
   0x1   :  { %11 = vsyncpa [#allocation3 + $0x1], 0 }
   0x2   :  { %12 = vsyncpa [#allocation6], 0 }
   0x3   :  { %13 = vsyncpa [#allocation4], 0 }
   0x4   :  { %15 = vsyncpa [#allocation4 + $0x1], 0  ;;  %s656_s15 = smov 0   ;;  %s658_s16 = smov 0  }
   0x5   :  { %s660_s17 = smov 0   ;;  %s662_s18 = smov 0  }
   0x6   :  { %s664_s19 = smov 0   ;;  %s666_s20 = smov 0  }
   0x7 LB: > { %s390_s21 = sadd.s32 4294967295, %s626_s20   ;;  %s391_s22 = sadd.s32 4294967294, %s626_s20   ;;  %s626_s20 = sphi %s666_s20, %s21_s20   ;;  %s622_s19 = sphi %s664_s19, %s907_s19   ;;  %s618_s18 = sphi %s662_s18, %s906_s18   ;;  %s614_s17 = sphi %s660_s17, %s905_s17   ;;  %s610_s16 = sphi %s658_s16, %s904_s16   ;;  %s606_s15 = sphi %s656_s15, %s903_s15  }
   0x8   : > { %p55_p0 = scmp.ne.s32.totalorder %s610_s16, %s606_s15  ;;  %p690_p1 = scmp.eq.s32.totalorder %s390_s21, 0 }
   0x9   : > { %p694_p2 = scmp.eq.s32.totalorder %s390_s21, 1  ;;  %p155_p3 = scmp.eq.s32.totalorder %s391_s22, 1 }
   0xa   : > { %s887_s23 = scalar_select %p690_p1, 1, 0 }
   0xb   : > { %s888_s24 = scalar_select %p694_p2, 1, 0 }
   0xc   : > { %p700_p4 = por %p690_p1, %p55_p0  ;;  %p392_p5 = scmp.ge.s32.totalorder %s626_s20, 1 }
   0xd   : > { %p705_p6 = por %p155_p3, %p55_p0  ;;  %p162_p7 = scmp.lt.s32.totalorder %s626_s20, 3 }
   0xe   : > { %s889_s25 = scalar_select %p700_p4, 1, 0 }
   0xf   : > { %s890_s26 = scalar_select %p705_p6, 1, 0 }
  0x10   : > { %p710_p8 = pnand %p392_p5, %p162_p7  ;;  %s628_s28 = smov [#allocation5]  }
  0x11   : > { %s177_s29 = sshll.u32 %s628_s28, 4  ;;  %s33_s5 = sadd.s32 1, %s622_s19  ;;  %s178_s29 = int_to_ptr.vmem [resolvable:$true] %s177_s29 }
  0x12   : > { %s891_s27 = scalar_select %p710_p8, 1, 0 }
  0x13   : > { %p415_p10 = pneg %p710_p8  ;;  %s42_s6 = sadd.s32 1, %s614_s17 }
  0x14   : > { %p725_p12 = scmp.ge.s32.totalorder %s33_s5, 2  ;;  %s482_s10 = scalar_lea.hbm %s879_s1, 128 }
  0x15   : > { %p719_p11 = pnand %p415_p10, %p690_p1  ;;  %p483_p13 = scmp.ne.s32.totalorder %s879_s1, %s482_s10 }
  0x16   : > { %s893_s7 = scalar_select %p725_p12, 1, 0 }
  0x17   : > { %p484_p0 = pneg %p719_p11  ;;  %p489_p7 = scmp.lt.u32.totalorder %s482_s10, %s879_s1 }
  0x19   : > { %p485_p3 = pnand %p484_p0, %p483_p13 }
  0x1b   : > { %p486_p5 = pneg %p485_p3 }
  0x1d   : > { %p491_p10 = pnand %p489_p7, %p486_p5 }
  0x1f   : > { %494 = shalt.err (!%p491_p10)
}
  0x20   : > { %s495_s21 = scalar_lea.vmem %s178_s29, 128  ;;  %p503_p4 = scmp.lt.s32.totalorder %s178_s29, %s178_s29 }
  0x21   : > { %p496_p9 = scmp.ne.s32.totalorder %s178_s29, %s495_s21  ;;  %p504_p8 = scmp.lt.s32.totalorder %s495_s21, %s495_s21 }
  0x23   : > { %p498_p6 = pnand %p496_p9, %p484_p0  ;;  %p505_p2 = por %p504_p8, %p503_p4 }
  0x25   : > { %p499_p1 = pneg %p498_p6 }
  0x27   : > { %p506_p12 = pnand %p505_p2, %p499_p1 }
  0x29   : > { %509 = shalt.err (!%p506_p12)
}
  0x2a   : > { %418 = dma.hbm_to_vmem [thread:$0]  (!%p719_p11), %s879_s1, 128, %s178_s29, [#allocation6]  }
  0x2b   : > { %p894_p4 = scmp.ne.s32.totalorder %s893_s7, 0  ;;  %p49_p1 = scmp.ne.s32.totalorder %s614_s17, %s610_s16 }
  0x2c   : > { %p50_p2 = scmp.eq.s32.totalorder %s626_s20, 0  ;;  %p428_p6 = scmp.lt.s32.totalorder %s626_s20, 2 }
  0x2d   : > { %s909_s5 = smov (%p894_p4, %s33_s5), 0  ;;  %p895_p12 = scmp.ne.s32.totalorder %s888_s24, 0 }
  0x2e   : > { %s37_s30 = ssub.s32 %s622_s19, %s909_s5  ;;  %p51_p9 = por %p50_p2, %p49_p1 }
  0x2f   : > { %p40_p8 = scmp.eq.s32.totalorder %s37_s30, 0  ;;  %p757_p13 = por %p895_p12, %p49_p1 }
  0x30   : > { %s194_s9 = sand.u32 1, %s614_s17   ;;  %s396_s7 = sshll.u32 %s622_s19, 7 }
  0x31   : > { %s765_s10 = scalar_select %p40_p8, %s614_s17, %s42_s6  }
  0x32   : > { %s395_s29 = sshll.u32 %s194_s9, 3  ;;  %s771_s13 = scalar_lea.hbm %s878_s0, %s396_s7 }
  0x33   : > { %s198_s24 = scalar_lea.vmem [#allocation2], %s395_s29  ;;  %p775_p11 = pnand %p428_p6, %p51_p9 }
  0x34   : > { %s206_s14 = sshll.u32 %s198_s24, 4  ;;  %s195_s6 = scalar_lea.sflag [#allocation3], %s194_s9  ;;  %s773_s14 = int_to_ptr.vmem [resolvable:$true] %s206_s14 }
  0x35   : > { %s510_s22 = scalar_lea.hbm %s771_s13, 128  ;;  %p512_p3 = pneg %p775_p11 }
  0x36   : > { %p511_p0 = scmp.ne.s32.totalorder %s771_s13, %s510_s22  ;;  %s515_s29 = scalar_lea.hbm %s878_s0, 256 }
  0x37   : > { %p516_p10 = scmp.lt.u32.totalorder %s771_s13, %s878_s0  ;;  %p517_p4 = scmp.lt.u32.totalorder %s515_s29, %s510_s22 }
  0x38   : > { %p513_p5 = pnand %p512_p3, %p511_p0  ;;  %p519_p2 = scmp.lt.u32.totalorder %s510_s22, %s771_s13 }
  0x39   : > { %p518_p1 = por %p517_p4, %p516_p10 }
  0x3a   : > { %p514_p7 = pneg %p513_p5 }
  0x3b   : > { %p520_p6 = por %p519_p2, %p518_p1 }
  0x3d   : > { %p521_p8 = pnand %p520_p6, %p514_p7 }
  0x3f   : > { %524 = shalt.err (!%p521_p8)
}
  0x40   : > { %s525_s9 = scalar_lea.vmem %s773_s14, 128  ;;  %s629_s12 = smov [#allocation2]  }
  0x41   : > { %p526_p9 = scmp.ne.s32.totalorder %s773_s14, %s525_s9  ;;  %s530_s24 = sshll.u32 %s629_s12, 4  ;;  %s531_s24 = int_to_ptr.vmem [resolvable:$false] %s530_s24 }
  0x42   : > { %s532_s28 = scalar_lea.vmem %s531_s24, 256  ;;  %p533_p5 = scmp.lt.s32.totalorder %s773_s14, %s531_s24 }
  0x43   : > { %p528_p12 = pnand %p526_p9, %p512_p3  ;;  %p534_p10 = scmp.lt.s32.totalorder %s532_s28, %s525_s9 }
  0x45   : > { %p529_p0 = pneg %p528_p12  ;;  %p535_p4 = por %p534_p10, %p533_p5 }
  0x47   : > { %p536_p1 = pnand %p535_p4, %p529_p0 }
  0x49   : > { %539 = shalt.err (!%p536_p1)
}
  0x4a   : > { %422 = dma.hbm_to_vmem [thread:$0]  (!%p775_p11), %s771_s13, 128, %s773_s14, %s195_s6  }
  0x4b   : > { %p898_p7 = scmp.ne.s32.totalorder %s891_s27, 0 }
  0x4c   : > { %s807_s22 = sand.u32 (!%p898_p7), 1, %s610_s16   ;;  %p899_p3 = scmp.ne.s32.totalorder (!%p898_p7), %s889_s25, 0 }
  0x4d   : > { %215 = sbr.rel (%p898_p7) target bundleno = 418 (0x1a2), region = 36  ;;  %s398_s30 = sshll.u32 (!%p898_p7), %s807_s22, 3 }
  0x4e   : > { %s218_s29 = scalar_lea.sflag (!%p898_p7), [#allocation3], %s807_s22  ;;  %s221_s7 = scalar_lea.vmem (!%p898_p7), [#allocation2], %s398_s30 }
  0x54   : > { %593 = dma.done.wait (%p899_p3), %s218_s29, 128  }
  0x55   : > { %595 = vsyncadd (%p899_p3), %s218_s29, 4294967168  ;;  %p900_p2 = scmp.ne.s32.totalorder %s887_s23, 0 }
  0x57   : > { %597 = dma.done.wait (%p900_p2), [#allocation6], 128  }
  0x58   : > { %599 = vsyncadd (%p900_p2), [#allocation6], 4294967168  ;;  %v250_v0 = vld [vmem:[%s221_s7] sm:$0xff]  ;;  %v252_v1 = vld [vmem:[#allocation5] sm:$0xff]  ;;  %s404_s14 = sshll.u32 %s618_s18, 7  ;;  %s249_s21 = scalar_lea.vmem [#allocation7], %s398_s30 }
  0x59   : > { %v251_v2 = vmul.f32 11.313708, %v250_v0  ;;  %v401_v11 = vld [vmem:[%s880_s2] ss:$0 sm:$0xff]  ;;  %s298_s6 = sshll.u32 %s249_s21, 4  ;;  %s829_s12 = scalar_lea.hbm %s882_s4, %s404_s14  ;;  %s831_s6 = int_to_ptr.vmem [resolvable:$true] %s298_s6 }
  0x5a   : > { %v402_v14 = vld [vmem:[%s881_s3] ss:$0 sm:$0xff]  ;;  %s284_s24 = scalar_lea.sflag [#allocation4], %s807_s22  ;;  %s540_s28 = scalar_lea.vmem %s831_s6, 128 }
  0x5b   : > { %v253_v3 = vadd.f32 %v252_v1, %v251_v2  ;;  %p541_p11 = scmp.ne.s32.totalorder %s831_s6, %s540_s28  ;;  %s630_s18 = smov [#allocation7]  }
  0x5c   : > { %s544_s30 = sshll.u32 %s630_s18, 4  ;;  %s545_s30 = int_to_ptr.vmem [resolvable:$false] %s544_s30 }
  0x5d   : > { %254 = vadd.xlane.f32.xlu0 %v253_v3  ;;  %p542_p6 = pnand %p541_p11, %p757_p13  ;;  %s546_s29 = scalar_lea.vmem %s545_s30, 256 }
  0x5e   : > { %p547_p9 = scmp.lt.s32.totalorder %s831_s6, %s545_s30  ;;  %p548_p12 = scmp.lt.s32.totalorder %s546_s29, %s540_s28 }
  0x5f   : > { %p543_p8 = pneg %p542_p6 }
  0x60   : > { %p549_p0 = por %p548_p12, %p547_p9 }
  0x62   : > { %p550_p5 = pnand %p549_p0, %p543_p8 }
  0xea   : > { %v255_v4 = vpop.xlane.xlu0 %254 }
  0xeb   : > { %v257_v5 = vmul.f32 0.0078125, %v255_v4 }
  0xed   : > { %v258_v6 = vsub.f32 %v253_v3, %v257_v5 }
  0xef   : > { %v259_v7 = vmul.f32 %v258_v6, %v258_v6 }
  0xf1   : > { %260 = vadd.xlane.f32.xlu0 %v259_v7 }
 0x17e   : > { %v261_v8 = vpop.xlane.xlu0 %260 }
 0x17f   : > { %v262_v9 = vmul.f32 0.0078125, %v261_v8 }
 0x181   : > { %v263_v10 = vadd.f32 1e-05, %v262_v9 }
 0x183   : > { %480 = vrsqrt.f32 %v263_v10 }
 0x18d   : > { %v481_v12 = vpop.eup %480 }
 0x18e   : > { %v272_v13 = vmul.f32 %v481_v12, %v401_v11 }
 0x190   : > { %v273_v15 = vmul.f32 %v272_v13, %v258_v6 }
 0x192   : > { %v281_v16 = vadd.f32 %v402_v14, %v273_v15 }
 0x194   : > { %282 = vst [vmem:[%s249_s21] sm:$0xff] %v281_v16 }
 0x195   : > { %553 = shalt.err (!%p550_p5)
}
 0x196   : > { %s554_s22 = scalar_lea.hbm %s829_s12, 128  ;;  %s558_s27 = scalar_lea.hbm %s882_s4, 256 }
 0x197   : > { %p555_p10 = scmp.ne.s32.totalorder %s829_s12, %s554_s22  ;;  %p559_p7 = scmp.lt.u32.totalorder %s829_s12, %s882_s4 }
 0x198   : > { %p560_p3 = scmp.lt.u32.totalorder %s558_s27, %s554_s22  ;;  %p562_p11 = scmp.lt.u32.totalorder %s554_s22, %s829_s12 }
 0x199   : > { %p556_p4 = pnand %p555_p10, %p757_p13 }
 0x19a   : > { %p561_p2 = por %p560_p3, %p559_p7 }
 0x19b   : > { %p557_p1 = pneg %p556_p4 }
 0x19c   : > { %p563_p6 = por %p562_p11, %p561_p2 }
 0x19e   : > { %p564_p8 = pnand %p563_p6, %p557_p1 }
 0x1a0   : > { %567 = shalt.err (!%p564_p8)
}
 0x1a1   : > { %413 = dma.vmem_to_hbm [thread:$0]  (%p757_p13), %s831_s6, 128, %s829_s12, %s284_s24  }
 0x1a2 PF: > { %s310_s14 = sand.u32 1, %s606_s15   ;;  %p901_p9 = scmp.ne.s32.totalorder %s890_s26, 0 }
 0x1a3   : > { %p902_p12 = scmp.ge.s32.totalorder %s626_s20, 2  ;;  %s311_s21 = scalar_lea.sflag [#allocation4], %s310_s14 }
 0x1a5   : > { %p424_p0 = pnand %p902_p12, %p901_p9 }
 0x1a7   : > { %601 = dma.done.wait (!%p424_p0), %s311_s21, 128  }
 0x1a8   : > { %603 = vsyncadd (!%p424_p0), %s311_s21, 4294967168  ;;  %s21_s20 = sadd.s32 1, %s626_s20   ;;  %s903_s15 = smov %s610_s16 }
 0x1a9   : > { %p18_p5 = scmp.ge.s32.totalorder %s21_s20, 4   ;;  %s904_s16 = smov %s614_s17 }
 0x1aa   : > { %s905_s17 = smov %s765_s10  ;;  %s906_s18 = smov %s622_s19 }
 0x1ab   : > { %s907_s19 = smov %s909_s5  ;;  %20 = sbr.rel (!%p18_p5) target bundleno = 7 (0x7), region = 86 }
 0x1b2   :  { %316 = vsyncpa [#allocation3], 1 }
 0x1b3   :  { %318 = vsyncpa [#allocation3 + $0x1], 1 }
 0x1b4   :  { %319 = vsyncpa [#allocation6], 1 }
 0x1b5   :  { %320 = vsyncpa [#allocation4], 1 }
 0x1b6   :  { %322 = vsyncpa [#allocation4 + $0x1], 1 }

</bundles_post_ra>
